<compile_context>
chip_gen: v6e
topology: v6e:2x2x1
jax: 0.10.0
libtpu: 0.0.40
codegen_flags: <defaults>
</compile_context>

<pallas_src>
import jax
import jax.numpy as jnp
from jax.experimental import pallas as pl
from jax.experimental.pallas import tpu as pltpu


# ---------------------------------------------------------------------------
# one-time parameter transform (NOT per-call): V * (diff @ R) == diff @ (R * V)
# ---------------------------------------------------------------------------
def fold_v_into_r(R, V, dtype=jnp.bfloat16):
    """Fold the diagonal V scale into R once, optionally downcasting (bf16 default)."""
    Rf = jnp.asarray(R, jnp.float32)
    Vf = jnp.asarray(V, jnp.float32).reshape(1, -1)
    return (Rf * Vf).astype(dtype)


# ---------------------------------------------------------------------------
# VMEM budget helpers (per-generation: v5e/v6e 128 MiB, v7x 64 MiB physical)
# ---------------------------------------------------------------------------
def _vmem_limit_bytes():
    try:
        cap = pltpu.get_tpu_info().vmem_capacity_bytes
    except Exception:
        cap = 64 * 1024 * 1024  # conservative (v7x-sized) fallback
    # ~75% of physical VMEM, never above 100 MiB.
    return min(int(0.75 * cap), 100 * 1024 * 1024)


def _pick_tiles(B, D, M, itemsize, vmem_budget):
    """VMEM-budget-aware (tk, tm) for the tiled path."""
    m_pad128 = pl.cdiv(M, 128) * 128
    # At least two M-blocks when M allows it, so the "parallel" axis can shard
    # across both v7x TensorCores (costs nothing on 1-TC v5e/v6e).
    if m_pad128 >= 256:
        tm = max(128, min(512, ((m_pad128 // 2) // 128) * 128))
    else:
        tm = m_pad128  # == 128
    # Per K-step VMEM: double-buffered R block (2*tk*tm*itemsize) plus
    # double-buffered x and y blocks (2 * 2 * B * tk * 4).  Keep within ~half
    # the budget to leave room for the accumulator / output / headroom.
    per_k_bytes = 2 * tm * itemsize + 4 * B * 4
    tk = (vmem_budget // 2) // max(per_k_bytes, 1)
    tk = max(128, min(2048, (tk // 128) * 128))
    tk = min(tk, pl.cdiv(D, 128) * 128)
    return tk, tm


# ---------------------------------------------------------------------------
# single-step kernel: whole problem resident in VMEM, scalar result to SMEM
# ---------------------------------------------------------------------------
def _l2_kernel_single(x_ref, y_ref, r_ref, o_ref):
    # subtraction in f32, cast to the (possibly bf16) weight dtype just for the MXU
    diff = (x_ref[...] - y_ref[...]).astype(r_ref.dtype)
    t = jnp.dot(diff, r_ref[...], preferred_element_type=jnp.float32)
    o_ref[0, 0] = jnp.sqrt(jnp.sum(t * t))


def _l2_single_step(x, y, R_scaled, *, vmem_limit):
    B, D = x.shape
    _, M = R_scaled.shape
    itemsize = jnp.dtype(R_scaled.dtype).itemsize
    out = pl.pallas_call(
        _l2_kernel_single,
        out_shape=jax.ShapeDtypeStruct((1, 1), jnp.float32),
        in_specs=[
            pl.BlockSpec(memory_space=pltpu.MemorySpace.VMEM),  # x (whole array)
            pl.BlockSpec(memory_space=pltpu.MemorySpace.VMEM),  # y
            pl.BlockSpec(memory_space=pltpu.MemorySpace.VMEM),  # R_scaled
        ],
        out_specs=pl.BlockSpec(memory_space=pltpu.MemorySpace.SMEM),
        compiler_params=pltpu.CompilerParams(vmem_limit_bytes=vmem_limit),
        cost_estimate=pl.CostEstimate(
            flops=2 * B * D * M,
            transcendentals=1,  # the final sqrt
            bytes_accessed=4 * 2 * B * D + itemsize * D * M + 4,
        ),
    )(x, y, R_scaled)
    return out[0, 0]


# ---------------------------------------------------------------------------
# tiled fallback for large D*M:
#   grid = (M-blocks "parallel", K-blocks "arbitrary")
#   per-M-block f32 accumulator, lane-dense (1,128) partial sum-of-squares out,
#   final sum + sqrt outside the kernel.
# ---------------------------------------------------------------------------
def _l2_kernel_tiled(x_ref, y_ref, r_ref, o_ref, acc_ref):
    k = pl.program_id(1)

    @pl.when(k == 0)
    def _():
        acc_ref[...] = jnp.zeros_like(acc_ref)

    diff = (x_ref[...] - y_ref[...]).astype(r_ref.dtype)
    acc_ref[...] += jnp.dot(diff, r_ref[...], preferred_element_type=jnp.float32)

    @pl.when(k == pl.num_programs(1) - 1)
    def _():
        a = acc_ref[...]
        # lane-dense write; only lane 0 is consumed by the wrapper
        o_ref[...] = jnp.full(o_ref.shape, jnp.sum(a * a), dtype=o_ref.dtype)


def _l2_tiled(x, y, R_scaled, *, vmem_limit, tk=None, tm=None):
    B, D = x.shape
    _, M = R_scaled.shape
    itemsize = jnp.dtype(R_scaled.dtype).itemsize

    tk_auto, tm_auto = _pick_tiles(B, D, M, itemsize, vmem_limit)
    tk = tk if tk is not None else tk_auto
    tm = tm if tm is not None else tm_auto

    # Zero-pad ragged D / M: zero K-columns and zero M-columns of R contribute
    # exactly 0 to the matmul / sum-of-squares, so this is numerically exact.
    D_pad = pl.cdiv(D, tk) * tk
    M_pad = pl.cdiv(M, tm) * tm
    if D_pad != D:
        x = jnp.pad(x, ((0, 0), (0, D_pad - D)))
        y = jnp.pad(y, ((0, 0), (0, D_pad - D)))
    if D_pad != D or M_pad != M:
        R_scaled = jnp.pad(R_scaled, ((0, D_pad - D), (0, M_pad - M)))

    n_m = M_pad // tm
    n_k = D_pad // tk

    partials = pl.pallas_call(
        _l2_kernel_tiled,
        out_shape=jax.ShapeDtypeStruct((n_m, 128), jnp.float32),
        grid=(n_m, n_k),
        in_specs=[
            pl.BlockSpec((B, tk), lambda m, k: (0, k)),   # x
            pl.BlockSpec((B, tk), lambda m, k: (0, k)),   # y
            pl.BlockSpec((tk, tm), lambda m, k: (k, m)),  # R_scaled
        ],
        out_specs=pl.BlockSpec((1, 128), lambda m, k: (m, 0)),
        scratch_shapes=[pltpu.VMEM((B, tm), jnp.float32)],
        compiler_params=pltpu.CompilerParams(
            dimension_semantics=("parallel", "arbitrary"),
            vmem_limit_bytes=vmem_limit,
        ),
        cost_estimate=pl.CostEstimate(
            flops=2 * B * D_pad * M_pad,
            transcendentals=0,
            bytes_accessed=4 * 2 * B * D_pad + itemsize * D_pad * M_pad + 4 * n_m * 128,
        ),
    )(x, y, R_scaled)

    return jnp.sqrt(jnp.sum(partials[:, 0]))


# ---------------------------------------------------------------------------
# public entry point
# ---------------------------------------------------------------------------
def l2_torch_pallas(x, y, R_scaled, *, single_step_byte_limit=None):
    """||V * ((x - y) @ R)||_F with V pre-folded into R_scaled (see fold_v_into_r)."""
    B, D = x.shape
    D2, M = R_scaled.shape
    assert D == D2, (D, D2)

    vmem_limit = _vmem_limit_bytes()
    if single_step_byte_limit is None:
        # single-step path has no double-buffering; allow up to ~half the budget
        single_step_byte_limit = vmem_limit // 2

    itemsize = jnp.dtype(R_scaled.dtype).itemsize
    working_set = 4 * (2 * B * D + 2 * B * M) + itemsize * D * M
    if working_set <= single_step_byte_limit:
        return _l2_single_step(x, y, R_scaled, vmem_limit=vmem_limit)
    return _l2_tiled(x, y, R_scaled, vmem_limit=vmem_limit)


if __name__ == "__main__":
    key = jax.random.PRNGKey(0)
    kx, ky, kr, kv = jax.random.split(key, 4)

    # small synthetic shapes consistent with the module
    B, D, M = 8, 256, 128
    x = jax.random.normal(kx, (B, D), dtype=jnp.float32)
    y = jax.random.normal(ky, (B, D), dtype=jnp.float32)
    # deterministic synthetic parameters (V would normally come from VD.npy)
    R = jax.random.normal(kr, (D, M), dtype=jnp.float32) / jnp.sqrt(D)
    V = jax.random.uniform(kv, (M,), dtype=jnp.float32) + 0.5

    # pure-JAX reference (literal PyTorch formulation)
    ref = jnp.linalg.norm(V.reshape(1, -1) * ((x - y) @ R))

    # ---- default path: bf16 R_scaled, single VMEM-resident step --------------
    R_bf16 = fold_v_into_r(R, V)  # bfloat16 by default
    out_bf16 = l2_torch_pallas(x, y, R_bf16)
    jax.block_until_ready(out_bf16)
    assert jnp.allclose(out_bf16, ref, rtol=2e-2, atol=2e-2), (out_bf16, ref)

    # ---- f32 parameter path (closer to PyTorch f32 numerics) -----------------
    R_f32 = fold_v_into_r(R, V, dtype=jnp.float32)
    out_f32 = l2_torch_pallas(x, y, R_f32)
    jax.block_until_ready(out_f32)
    assert jnp.allclose(out_f32, ref, rtol=1e-4, atol=1e-4), (out_f32, ref)

    # ---- tiled fallback (forced small tiles): exercises the parallel M axis,
    #      the K reduction axis, and exact zero-padding of ragged D ------------
    D2s, M2s = 300, 256
    x2 = jax.random.normal(kx, (B, D2s), dtype=jnp.float32)
    y2 = jax.random.normal(ky, (B, D2s), dtype=jnp.float32)
    R2 = jax.random.normal(kr, (D2s, M2s), dtype=jnp.float32) / jnp.sqrt(D2s)
    V2 = jax.random.uniform(kv, (M2s,), dtype=jnp.float32) + 0.5
    R2_f32 = fold_v_into_r(R2, V2, dtype=jnp.float32)
    out_tiled = _l2_tiled(x2, y2, R2_f32, vmem_limit=_vmem_limit_bytes(), tk=128, tm=128)
    jax.block_until_ready(out_tiled)
    ref2 = jnp.linalg.norm(V2.reshape(1, -1) * ((x2 - y2) @ R2))
    assert jnp.allclose(out_tiled, ref2, rtol=1e-4, atol=1e-4), (out_tiled, ref2)

    print("KERNEL_OK")
</pallas_src>

<mosaic_0001>
module attributes {stable_mosaic.version = 11 : i64} {
  func.func @_l2_kernel_single(%arg0: memref<8x256xf32, #tpu.memory_space<vmem>>, %arg1: memref<8x256xf32, #tpu.memory_space<vmem>>, %arg2: memref<256x128xbf16, #tpu.memory_space<vmem>>, %arg3: memref<1x1xf32, #tpu.memory_space<smem>>) attributes {dimension_semantics = [], scalar_prefetch = 0 : i64, scratch_operands = 0 : i64, tpu.core_type = #tpu.core_type<tc>} {
    %c0 = arith.constant 0 : index
    %c0_0 = arith.constant 0 : index
    %0 = vector.load %arg0[%c0, %c0_0] : memref<8x256xf32, #tpu.memory_space<vmem>>, vector<8x256xf32>
    %c0_1 = arith.constant 0 : index
    %c0_2 = arith.constant 0 : index
    %1 = vector.load %arg1[%c0_1, %c0_2] : memref<8x256xf32, #tpu.memory_space<vmem>>, vector<8x256xf32>
    %2 = arith.subf %0, %1 : vector<8x256xf32>
    %3 = arith.truncf %2 : vector<8x256xf32> to vector<8x256xbf16>
    %c0_3 = arith.constant 0 : index
    %c0_4 = arith.constant 0 : index
    %4 = vector.load %arg2[%c0_3, %c0_4] : memref<256x128xbf16, #tpu.memory_space<vmem>>, vector<256x128xbf16>
    %cst = arith.constant dense<0.000000e+00> : vector<8x128xf32>
    %5 = tpu.matmul %3, %4, %cst {dimension_numbers = #tpu.dot_dimension_numbers<[1], [0], [0], [1], [0, 0, 1, 1], [], []>} : vector<8x256xbf16>, vector<256x128xbf16>, vector<8x128xf32> -> vector<8x128xf32>
    %6 = arith.mulf %5, %5 : vector<8x128xf32>
    %7 = vector.shape_cast %6 : vector<8x128xf32> to vector<1x8x128xf32>
    %cst_5 = arith.constant dense<0.000000e+00> : vector<1xf32>
    %8 = vector.multi_reduction <add>, %7, %cst_5 [1, 2] : vector<1x8x128xf32> to vector<1xf32>
    %9 = vector.shape_cast %8 : vector<1xf32> to vector<1x1x1xf32>
    %10 = vector.extract %9[0, 0, 0] : f32 from vector<1x1x1xf32>
    %11 = math.sqrt %10 : f32
    %c0_6 = arith.constant 0 : index
    %c0_7 = arith.constant 0 : index
    %12 = memref.load %arg3[%c0_6, %c0_7] : memref<1x1xf32, #tpu.memory_space<smem>>
    memref.store %11, %arg3[%c0_6, %c0_7] : memref<1x1xf32, #tpu.memory_space<smem>>
    return
  }
}

</mosaic_0001>

<bundles_post_ra>
// kernel: tpu_custom_call.1
= control target key start
LH: loop header
LB: loop body
LE: loop exit
PB: predicated region body
PF: predicated region fallthrough
CT: control target
= control target key end

     0   :  { %8 = vsyncpa [#allocation3], 0  ;;  %s443_s0 = inlined_call_operand.hbm [shape: f32[8,256], index: 0, kind: input, shape index: {}]   ;;  %s444_s1 = inlined_call_operand.hbm [shape: f32[8,256], index: 1, kind: input, shape index: {}]   ;;  %s445_s2 = inlined_call_operand.hbm [shape: bf16[256,128], index: 2, kind: input, shape index: {}]   ;;  %s446_s3 = inlined_call_operand.hbm [shape: f32[1,1], index: 3, kind: output, shape index: {}]  }
   0x1   :  { %9 = vsyncpa [#allocation6], 0 }
   0x2   :  { %10 = vsyncpa [#allocation4], 0  ;;  %s405_s12 = smov [#allocation5]   ;;  %s406_s14 = smov [#allocation2]  }
   0x3   :  { %s27_s13 = sshll.u32 %s405_s12, 4  ;;  %s17_s15 = sshll.u32 %s406_s14, 4  ;;  %s28_s13 = int_to_ptr.vmem [resolvable:$true] %s27_s13  ;;  %s18_s15 = int_to_ptr.vmem [resolvable:$true] %s17_s15 }
   0x4   :  { %s339_s16 = scalar_lea.vmem %s28_s13, 256  ;;  %p344_p1 = scmp.lt.s32.totalorder %s28_s13, %s28_s13 }
   0x5   :  { %p340_p0 = scmp.ne.s32.totalorder %s28_s13, %s339_s16  ;;  %p345_p2 = scmp.lt.s32.totalorder %s339_s16, %s339_s16 }
   0x7   :  { %p346_p3 = por %p345_p2, %p344_p1 }
   0x9   :  { %p347_p4 = pnand %p346_p3, %p340_p0 }
   0xb   :  { %350 = shalt.err (!%p347_p4)
}
   0xc   :  { %30 = dma.hbm_to_vmem [thread:$0]  %s444_s1, 256, %s28_s13, [#allocation6]  }
   0xd   :  { %s359_s19 = scalar_lea.vmem %s18_s15, 256  ;;  %p364_p6 = scmp.lt.s32.totalorder %s18_s15, %s18_s15 }
   0xe   :  { %p360_p5 = scmp.ne.s32.totalorder %s18_s15, %s359_s19  ;;  %p365_p7 = scmp.lt.s32.totalorder %s359_s19, %s359_s19 }
  0x10   :  { %p366_p8 = por %p365_p7, %p364_p6 }
  0x12   :  { %p367_p9 = pnand %p366_p8, %p360_p5 }
  0x14   :  { %370 = shalt.err (!%p367_p9)
}
  0x15   :  { %20 = dma.hbm_to_vmem [thread:$0]  %s443_s0, 256, %s18_s15, [#allocation3]  }
  0x16   :  { %s407_s22 = smov [#allocation7]  }
  0x17   :  { %s36_s23 = sshll.u32 %s407_s22, 4  ;;  %s37_s23 = int_to_ptr.vmem [resolvable:$true] %s36_s23 }
  0x18   :  { %s379_s24 = scalar_lea.vmem %s37_s23, 2048  ;;  %p384_p11 = scmp.lt.s32.totalorder %s37_s23, %s37_s23 }
  0x19   :  { %p380_p10 = scmp.ne.s32.totalorder %s37_s23, %s379_s24  ;;  %p385_p12 = scmp.lt.s32.totalorder %s379_s24, %s379_s24 }
  0x1b   :  { %p386_p13 = por %p385_p12, %p384_p11 }
  0x1d   :  { %p387_p0 = pnand %p386_p13, %p380_p10 }
  0x1f   :  { %390 = shalt.err (!%p387_p0)
}
  0x20   :  { %s408_s1 = smov 64   ;;  %s409_s25 = smov 4  }
  0x21   :  { %42 = dma.hbm_to_vmem [thread:$0]  %s445_s2, 2048, %s37_s23, [#allocation6], %s408_s1, %s408_s1, %s409_s25  }
  0x22   :  { %399 = dma.done.wait [#allocation3], 256  }
  0x23   :  { %400 = vsyncadd [#allocation3], 4294967040 }
  0x24   :  { %401 = dma.done.wait [#allocation6], 2304  }
  0x25   :  { %402 = vsyncadd [#allocation6], 4294964992  ;;  %v313_v0 = vld [vmem:[#allocation7 + $0x78] sm:$0xff]   ;;  %v315_v2 = vld [vmem:[#allocation7 + $0x70] sm:$0xff]   ;;  %s410_s28 = smov [#allocation8]  }
  0x26   :  { %v314_v1 = vld [vmem:[#allocation7 + $0x38] sm:$0xff]   ;;  %281 = vmatprep.subr.bf16.mxu0 %v313_v0  ;;  %v316_v3 = vld [vmem:[#allocation7 + $0x30] sm:$0xff]   ;;  %v317_v4 = vld [vmem:[#allocation7 + $0x68] sm:$0xff]  }
  0x27   :  { %282 = vmatpush3.bf16.msra.mxu0 %v314_v1  ;;  %v318_v5 = vld [vmem:[#allocation7 + $0x28] sm:$0xff]   ;;  %v319_v6 = vld [vmem:[#allocation7 + $0x60] sm:$0xff]   ;;  %v321_v8 = vld [vmem:[#allocation7 + $0x58] sm:$0xff]  }
  0x28   :  { %283 = vmatprep.subr.bf16.mxu0 %v315_v2  ;;  %v320_v7 = vld [vmem:[#allocation7 + $0x20] sm:$0xff]   ;;  %v322_v9 = vld [vmem:[#allocation7 + $0x18] sm:$0xff]   ;;  %v323_v10 = vld [vmem:[#allocation7 + $0x50] sm:$0xff]  }
  0x29   :  { %v54_v11 = vld [vmem:[#allocation2 + $0x8] sm:$0xff]  ;;  %v56_v12 = vld [vmem:[#allocation5 + $0x8] sm:$0xff]  ;;  %v324_v14 = vld [vmem:[#allocation7 + $0x10] sm:$0xff]  }
  0x2a   :  { %v58_v13 = vsub.f32 %v54_v11, %v56_v12  ;;  %v325_v16 = vld [vmem:[#allocation7 + $0x48] sm:$0xff]   ;;  %v53_v18 = vld [vmem:[#allocation2] sm:$0xff]  ;;  %v55_v19 = vld [vmem:[#allocation5] sm:$0xff] }
  0x2b   :  { %284 = vmatpush3.bf16.msra.mxu0 %v316_v3  ;;  %v326_v17 = vld [vmem:[#allocation7 + $0x8] sm:$0xff]   ;;  %v327_v20 = vld [vmem:[#allocation7 + $0x40] sm:$0xff]   ;;  %v57_v21 = vsub.f32 %v53_v18, %v55_v19 }
  0x2c   :  { %285 = vmatprep.subr.bf16.mxu0 %v317_v4  ;;  %v60_v15 = vpack.c.bf16 %v58_v13, %v58_v13  ;;  %v328_v22 = vld [vmem:[#allocation7] sm:$0xff]  }
  0x2d   :  { %v59_v23 = vpack.c.bf16 %v57_v21, %v57_v21 }
  0x2e   :  { %221 = vmatprep.mubr.bf16.mxu0 %v60_v15 }
  0x2f   :  { %286 = vmatpush3.bf16.msra.mxu0 %v318_v5 }
  0x30   :  { %287 = vmatprep.subr.bf16.mxu0 %v319_v6 }
  0x33   :  { %288 = vmatpush3.bf16.msra.mxu0 %v320_v7 }
  0x34   :  { %289 = vmatprep.subr.bf16.mxu0 %v321_v8 }
  0x37   :  { %290 = vmatpush3.bf16.msra.mxu0 %v322_v9 }
  0x38   :  { %291 = vmatprep.subr.bf16.mxu0 %v323_v10 }
  0x3b   :  { %292 = vmatpush3.bf16.msra.mxu0 %v324_v14 }
  0x3c   :  { %293 = vmatprep.subr.bf16.mxu0 %v325_v16 }
  0x3f   :  { %294 = vmatpush3.bf16.msra.mxu0 %v326_v17 }
  0x40   :  { %295 = vmatprep.subr.bf16.mxu0 %v327_v20 }
  0x43   :  { %296 = vmatpush3.bf16.msra.mxu0 %v328_v22 }
  0x46   :  { %222 = vmatmul.mubr.bf16.vlgmr.msra.gmra.mxu0 %v59_v23 }
 0x106   :  { %v297_v24 = vpop.f32.mrf.mxu0 }
 0x108   :  { %v298_v25 = vpop.f32.mrf.mxu0 }
 0x109   :  { %v299_v26 = vadd.f32 %v298_v25, %v297_v24 }
 0x10a   :  { %v300_v27 = vpop.f32.mrf.mxu0 }
 0x10b   :  { %v229_v28 = vmul.f32 %v299_v26, %v299_v26 }
 0x10c   :  { %v301_v29 = vpop.f32.mrf.mxu0 }
 0x10d   :  { %230 = vadd.xlane.f32.xlu0 %v229_v28 }
 0x196   :  { %v231_v30 = vpop.xlane.xlu0 %230 }
 0x197   :  { %v232_v31 = vrot.slane %v231_v30, 4 }
 0x199   :  { %v233_v32 = vadd.f32 %v232_v31, %v231_v30 }
 0x19b   :  { %v234_v33 = vrot.slane %v233_v32, 2 }
 0x19d   :  { %v235_v34 = vadd.f32 %v234_v33, %v233_v32 }
 0x19f   :  { %v236_v35 = vrot.slane %v235_v34, 1 }
 0x1a1   :  { %v237_v36 = vadd.f32 %v236_v35, %v235_v34 }
 0x1a3   :  { %303 = vpush %v237_v36 }
 0x1d4   :  { %s304_s0 = spop %303 }
 0x1d5   :  { %v239_v37 = vstv %s304_s0 }
 0x1d6   :  { %329 = vrsqrt.f32 %v239_v37  ;;  %vm242_vm0 = vcmp.eq.f32.partialorder %v239_v37, inf  ;;  %v245_v40 = vand.u32 2147483648, %v239_v37  ;;  %vm244_vm1 = vcmp.eq.f32.partialorder %v239_v37, 0.0 }
 0x1e3   :  { %v330_v38 = vpop.eup %329 }
 0x1e4   :  { %v241_v39 = vmul.f32 %v330_v38, %v239_v37 }
 0x1e6   :  { %v243_v41 = vsel %vm242_vm0, %v239_v37, %v241_v39 }
 0x1e7   :  { %v246_v42 = vsel %vm244_vm1, %v245_v40, %v243_v41 }
 0x1e8   :  { %305 = vpush %v246_v42 }
 0x219   :  { %s306_s2 = spop %305 }
 0x21a   :  { %249 = sst [smem:[#allocation8]] %s306_s2 }
 0x21b   :  { %257 = dma.smem_to_hbm %s410_s28, 16, %s446_s3, [#allocation4]  }
 0x21c   :  { %403 = dma.done.wait [#allocation4], 16  }
 0x21d   :  { %404 = vsyncadd [#allocation4], 4294967280 }
 0x21e   :  { %261 = sfence }
 0x21f   :  { %262 = vsyncpa [#allocation3], 1 }
 0x220   :  { %263 = vsyncpa [#allocation6], 1 }
 0x221   :  { %264 = vsyncpa [#allocation4], 1 }

</bundles_post_ra>
